<compile_context>
chip_gen: v5e
topology: v5e:2x2
jax: 0.10.0
libtpu: 0.0.40
codegen_flags: <defaults>
</compile_context>

<pallas_src>
import jax
import jax.numpy as jnp
from jax.experimental import pallas as pl
from jax.experimental.pallas import tpu as pltpu

_LANE = 128       # TPU lane width
_SUBLANE = 8      # TPU sublane width (f32)
_NEG_BIG = -1e30  # effectively -inf for padded softmax lanes (exp underflows to 0)


def _round_up(n, m):
    return ((n + m - 1) // m) * m


def _two_layer_kernel(x_ref, w1_ref, b1_ref, w2_ref, b2_ref, out_ref):
    # x_ref:  (TB, D)    w1_ref: (D, Hp)   b1_ref: (1, Hp)   [x/W1/W2 may be bf16]
    # w2_ref: (Hp, Cp)   b2_ref: (1, Cp)   out_ref: (TB, Cp) [biases are f32]
    x = x_ref[...]

    # fc1 + sigmoid (f32 accumulation on the MXU; sigmoid in f32 -> v5e safe).
    h = jnp.dot(x, w1_ref[...], preferred_element_type=jnp.float32) + b1_ref[...]
    h = 1.0 / (1.0 + jnp.exp(-h))

    # fc2. Padded hidden lanes contribute sigmoid(0) * 0 = 0 (W2 pad rows are zero).
    logits = jnp.dot(h.astype(w2_ref.dtype), w2_ref[...],
                     preferred_element_type=jnp.float32) + b2_ref[...]

    # Softmax over the padded class lanes. Pad lanes carry b2 = -1e30, so
    # exp underflows to exactly 0 and they get zero probability mass.
    m = jnp.max(logits, axis=-1, keepdims=True)
    e = jnp.exp(logits - m)
    denom = jnp.sum(e, axis=-1, keepdims=True)
    # Exact divide (NOT approx reciprocal) so each row sums to 1 to f32 precision.
    out_ref[...] = (e / denom).astype(out_ref.dtype)


def pad_params(w1, b1, w2, b2, *, compute_dtype=jnp.bfloat16):
    """Pad/cast parameters once at init (hoisted out of the per-call path).

    w1: (D, H), b1: (H,), w2: (H, Cls), b2: (Cls,).
    """
    D, H = w1.shape
    Cls = w2.shape[1]
    Hp = _round_up(H, _LANE)
    Cp = _round_up(Cls, _LANE)

    w1p = jnp.pad(w1.astype(compute_dtype), ((0, 0), (0, Hp - H)))
    b1p = jnp.pad(b1.astype(jnp.float32).reshape(1, H), ((0, 0), (0, Hp - H)))
    w2p = jnp.pad(w2.astype(compute_dtype), ((0, Hp - H), (0, Cp - Cls)))
    b2p = jnp.full((1, Cp), _NEG_BIG, dtype=jnp.float32)
    b2p = b2p.at[:, :Cls].set(b2.astype(jnp.float32).reshape(1, Cls))
    return {
        "w1": w1p, "b1": b1p, "w2": w2p, "b2": b2p,
        "input_dim": D, "num_classes": Cls, "compute_dtype": compute_dtype,
    }


def two_layer_net(x_nchw, params, *, block_b=2048, out_dtype=jnp.bfloat16):
    """Forward pass. Returns softmax probabilities of shape (B, num_classes)."""
    w1p, b1p, w2p, b2p = params["w1"], params["b1"], params["w2"], params["b2"]
    D = params["input_dim"]
    Cls = params["num_classes"]
    compute_dtype = params["compute_dtype"]
    Hp = w1p.shape[1]
    Cp = w2p.shape[1]

    B = x_nchw.shape[0]
    x2d = x_nchw.reshape(B, -1)                 # == torch.flatten(x, start_dim=1)
    assert x2d.shape[1] == D
    if x2d.dtype != compute_dtype:
        # Single elementwise cast; XLA fuses this into x's producer in a real
        # pipeline, so it is not a standalone extra HBM pass over x.
        x2d = x2d.astype(compute_dtype)

    # Pad batch only to the sublane multiple of 8 (<= 7 rows); partial tiles
    # relative to TB are handled by the cdiv grid + masked stores.
    Bp = _round_up(max(B, _SUBLANE), _SUBLANE)
    if Bp != B:
        x2d = jnp.pad(x2d, ((0, Bp - B), (0, 0)))

    # Batch tile: as large as block_b, but keep >= 4 grid steps when B allows
    # (v7x megacore: 2 TCs x 2 steps each for double-buffering).
    block_b = max(_SUBLANE, _round_up(block_b, _SUBLANE))
    TB = min(block_b, _round_up(pl.cdiv(Bp, 4), _SUBLANE))
    grid = (pl.cdiv(Bp, TB),)

    x_item = jnp.dtype(x2d.dtype).itemsize
    w_item = jnp.dtype(w1p.dtype).itemsize
    o_item = jnp.dtype(out_dtype).itemsize

    # Double-buffered x/out tiles + resident (but double-allocated) weights.
    vmem_need = (2 * TB * D * x_item + 2 * TB * Cp * o_item
                 + 2 * (D * Hp + Hp * Cp) * w_item + 2 * (Hp + Cp) * 4)
    # Cap at 48 MiB so the same config fits v7x's 64 MiB-per-TC VMEM.
    vmem_limit = int(min(48 * 1024 * 1024, max(32 * 1024 * 1024, 2 * vmem_need)))

    cost = pl.CostEstimate(
        flops=2 * Bp * D * Hp + 2 * Bp * Hp * Cp,
        transcendentals=Bp * Hp + Bp * Cp,
        bytes_accessed=(Bp * D * x_item + (D * Hp + Hp * Cp) * w_item
                        + (Hp + Cp) * 4 + Bp * Cp * o_item),
    )

    out = pl.pallas_call(
        _two_layer_kernel,
        out_shape=jax.ShapeDtypeStruct((Bp, Cp), out_dtype),
        grid_spec=pltpu.PrefetchScalarGridSpec(
            num_scalar_prefetch=0,
            grid=grid,
            in_specs=[
                pl.BlockSpec((TB, D), lambda i: (i, 0)),    # x: streamed / pipelined
                pl.BlockSpec((D, Hp), lambda i: (0, 0)),    # W1: VMEM-resident
                pl.BlockSpec((1, Hp), lambda i: (0, 0)),    # b1 (f32)
                pl.BlockSpec((Hp, Cp), lambda i: (0, 0)),   # W2: VMEM-resident
                pl.BlockSpec((1, Cp), lambda i: (0, 0)),    # b2 (f32, -1e30 pad lanes)
            ],
            out_specs=pl.BlockSpec((TB, Cp), lambda i: (i, 0)),
        ),
        compiler_params=pltpu.CompilerParams(
            dimension_semantics=("parallel",),   # batch tiles independent -> megacore
            vmem_limit_bytes=vmem_limit,
        ),
        cost_estimate=cost,
    )(x2d, w1p, b1p, w2p, b2p)

    # TODO(synk): in a fused pipeline, keep the (Bp, Cp) slab and fold this slice
    # into the consumer to avoid re-reading the padded class lanes.
    return out[:B, :Cls]


if __name__ == "__main__":
    # Small shapes consistent with the module: batch=2, channels=4, spatial=16x16.
    B, C, Hs, Ws = 2, 4, 16, 16
    input_dim = C * Hs * Ws          # 1024
    hidden_size = 32
    num_classes = 10

    key = jax.random.PRNGKey(0)
    kx, k1, k2, k3, k4 = jax.random.split(key, 5)

    x = jax.random.normal(kx, (B, C, Hs, Ws), dtype=jnp.float32)

    # Deterministic parameter init (uniform, scaled like nn.Linear's default).
    bound1 = 1.0 / (input_dim ** 0.5)
    bound2 = 1.0 / (hidden_size ** 0.5)
    w1 = jax.random.uniform(k1, (input_dim, hidden_size), jnp.float32, -bound1, bound1)
    b1 = jax.random.uniform(k2, (hidden_size,), jnp.float32, -bound1, bound1)
    w2 = jax.random.uniform(k3, (hidden_size, num_classes), jnp.float32, -bound2, bound2)
    b2 = jax.random.uniform(k4, (num_classes,), jnp.float32, -bound2, bound2)

    # Plain-JAX reference (matches the PyTorch forward; F.softmax uses dim=1 on 2D).
    ref = jax.nn.softmax(
        jax.nn.sigmoid(x.reshape(B, -1) @ w1 + b1) @ w2 + b2, axis=-1
    )

    # 1) f32 path: tight check of the kernel math (exact softmax normalization).
    params_f32 = pad_params(w1, b1, w2, b2, compute_dtype=jnp.float32)
    out_f32 = jax.block_until_ready(two_layer_net(x, params_f32, out_dtype=jnp.float32))
    assert out_f32.shape == (B, num_classes)
    assert jnp.allclose(out_f32, ref, atol=2e-3, rtol=2e-3), \
        float(jnp.max(jnp.abs(out_f32 - ref)))
    assert jnp.allclose(jnp.sum(out_f32, axis=-1), 1.0, atol=1e-4)

    # 2) Default fast path: bf16 streaming of x/W1/W2 + bf16 output (looser
    #    tolerance covers bf16 input/output quantization; normalization exact in f32
    #    before the final bf16 store).
    params = pad_params(w1, b1, w2, b2)                       # bf16 compute dtype
    out = jax.block_until_ready(two_layer_net(x, params))     # bf16 output
    out = out.astype(jnp.float32)
    assert out.shape == (B, num_classes)
    assert jnp.allclose(out, ref, atol=1e-2), float(jnp.max(jnp.abs(out - ref)))
    assert jnp.allclose(jnp.sum(out, axis=-1), 1.0, atol=1e-2)

    print("KERNEL_OK")
</pallas_src>

<mosaic_0001>
module attributes {stable_mosaic.version = 11 : i64} {
  func.func @_two_layer_kernel(%arg0: i32, %arg1: memref<8x1024xf32, #tpu.memory_space<vmem>>, %arg2: memref<1024x128xf32, #tpu.memory_space<vmem>>, %arg3: memref<1x128xf32, #tpu.memory_space<vmem>>, %arg4: memref<128x128xf32, #tpu.memory_space<vmem>>, %arg5: memref<1x128xf32, #tpu.memory_space<vmem>>, %arg6: memref<8x128xf32, #tpu.memory_space<vmem>>) attributes {dimension_semantics = [#tpu.dimension_semantics<parallel>], iteration_bounds = array<i64: 1>, scalar_prefetch = 0 : i64, scratch_operands = 0 : i64, tpu.core_type = #tpu.core_type<tc>, window_params = [{transform_indices = @transform_0, window_bounds = array<i64: 8, 1024>}, {pipeline_mode = #tpu.pipeline_mode<synchronous>, transform_indices = @transform_1, window_bounds = array<i64: 1024, 128>}, {pipeline_mode = #tpu.pipeline_mode<synchronous>, transform_indices = @transform_2, window_bounds = array<i64: 1, 128>}, {pipeline_mode = #tpu.pipeline_mode<synchronous>, transform_indices = @transform_3, window_bounds = array<i64: 128, 128>}, {pipeline_mode = #tpu.pipeline_mode<synchronous>, transform_indices = @transform_4, window_bounds = array<i64: 1, 128>}, {transform_indices = @transform_5, window_bounds = array<i64: 8, 128>}]} {
    %c0 = arith.constant 0 : index
    %c0_0 = arith.constant 0 : index
    %0 = vector.load %arg1[%c0, %c0_0] : memref<8x1024xf32, #tpu.memory_space<vmem>>, vector<8x1024xf32>
    %c0_1 = arith.constant 0 : index
    %c0_2 = arith.constant 0 : index
    %1 = vector.load %arg2[%c0_1, %c0_2] : memref<1024x128xf32, #tpu.memory_space<vmem>>, vector<1024x128xf32>
    %cst = arith.constant dense<0.000000e+00> : vector<8x128xf32>
    %2 = tpu.matmul %0, %1, %cst {dimension_numbers = #tpu.dot_dimension_numbers<[1], [0], [0], [1], [0, 0, 1, 1], [], []>} : vector<8x1024xf32>, vector<1024x128xf32>, vector<8x128xf32> -> vector<8x128xf32>
    %c0_3 = arith.constant 0 : index
    %c0_4 = arith.constant 0 : index
    %3 = vector.load %arg3[%c0_3, %c0_4] : memref<1x128xf32, #tpu.memory_space<vmem>>, vector<1x128xf32>
    %4 = vector.broadcast %3 : vector<1x128xf32> to vector<8x128xf32>
    %5 = arith.addf %2, %4 : vector<8x128xf32>
    %cst_5 = arith.constant 0.000000e+00 : f32
    %6 = vector.broadcast %cst_5 : f32 to vector<8x128xf32>
    %7 = arith.subf %6, %5 : vector<8x128xf32>
    %8 = math.exp %7 : vector<8x128xf32>
    %cst_6 = arith.constant 1.000000e+00 : f32
    %9 = vector.broadcast %cst_6 : f32 to vector<8x128xf32>
    %10 = arith.addf %9, %8 : vector<8x128xf32>
    %cst_7 = arith.constant 1.000000e+00 : f32
    %11 = vector.broadcast %cst_7 : f32 to vector<8x128xf32>
    %12 = arith.divf %11, %10 : vector<8x128xf32>
    %c0_8 = arith.constant 0 : index
    %c0_9 = arith.constant 0 : index
    %13 = vector.load %arg4[%c0_8, %c0_9] : memref<128x128xf32, #tpu.memory_space<vmem>>, vector<128x128xf32>
    %cst_10 = arith.constant dense<0.000000e+00> : vector<8x128xf32>
    %14 = tpu.matmul %12, %13, %cst_10 {dimension_numbers = #tpu.dot_dimension_numbers<[1], [0], [0], [1], [0, 0, 1, 1], [], []>} : vector<8x128xf32>, vector<128x128xf32>, vector<8x128xf32> -> vector<8x128xf32>
    %c0_11 = arith.constant 0 : index
    %c0_12 = arith.constant 0 : index
    %15 = vector.load %arg5[%c0_11, %c0_12] : memref<1x128xf32, #tpu.memory_space<vmem>>, vector<1x128xf32>
    %16 = vector.broadcast %15 : vector<1x128xf32> to vector<8x128xf32>
    %17 = arith.addf %14, %16 : vector<8x128xf32>
    %cst_13 = arith.constant dense<0xFF800000> : vector<8xf32>
    %18 = vector.multi_reduction <maximumf>, %17, %cst_13 [1] : vector<8x128xf32> to vector<8xf32>
    %19 = vector.shape_cast %18 : vector<8xf32> to vector<8x1xf32>
    %20 = vector.broadcast %19 : vector<8x1xf32> to vector<8x128xf32>
    %21 = arith.subf %17, %20 : vector<8x128xf32>
    %22 = math.exp %21 : vector<8x128xf32>
    %cst_14 = arith.constant dense<0.000000e+00> : vector<8xf32>
    %23 = vector.multi_reduction <add>, %22, %cst_14 [1] : vector<8x128xf32> to vector<8xf32>
    %24 = vector.shape_cast %23 : vector<8xf32> to vector<8x1xf32>
    %25 = vector.broadcast %24 : vector<8x1xf32> to vector<8x128xf32>
    %26 = arith.divf %22, %25 : vector<8x128xf32>
    %c0_15 = arith.constant 0 : index
    %c0_16 = arith.constant 0 : index
    %27 = vector.load %arg6[%c0_15, %c0_16] : memref<8x128xf32, #tpu.memory_space<vmem>>, vector<8x128xf32>
    tpu.vector_store %arg6[%c0_15, %c0_16], %26 {strides = array<i32>} : memref<8x128xf32, #tpu.memory_space<vmem>>, vector<8x128xf32>,
    return
  }
  func.func @transform_0(%arg0: i32) -> (i32, i32) {
    %c0_i32 = arith.constant 0 : i32
    %c0_i32_0 = arith.constant 0 : i32
    return %arg0, %c0_i32 : i32, i32
  }
  func.func @transform_1(%arg0: i32) -> (i32, i32) {
    %c0_i32 = arith.constant 0 : i32
    %c0_i32_0 = arith.constant 0 : i32
    %c0_i32_1 = arith.constant 0 : i32
    return %c0_i32, %c0_i32_0 : i32, i32
  }
  func.func @transform_2(%arg0: i32) -> (i32, i32) {
    %c0_i32 = arith.constant 0 : i32
    %c0_i32_0 = arith.constant 0 : i32
    %c0_i32_1 = arith.constant 0 : i32
    return %c0_i32, %c0_i32_0 : i32, i32
  }
  func.func @transform_3(%arg0: i32) -> (i32, i32) {
    %c0_i32 = arith.constant 0 : i32
    %c0_i32_0 = arith.constant 0 : i32
    %c0_i32_1 = arith.constant 0 : i32
    return %c0_i32, %c0_i32_0 : i32, i32
  }
  func.func @transform_4(%arg0: i32) -> (i32, i32) {
    %c0_i32 = arith.constant 0 : i32
    %c0_i32_0 = arith.constant 0 : i32
    %c0_i32_1 = arith.constant 0 : i32
    return %c0_i32, %c0_i32_0 : i32, i32
  }
  func.func @transform_5(%arg0: i32) -> (i32, i32) {
    %c0_i32 = arith.constant 0 : i32
    %c0_i32_0 = arith.constant 0 : i32
    return %arg0, %c0_i32 : i32, i32
  }
}

</mosaic_0001>

<bundles_post_ra>
// kernel: tpu_custom_call.1
= control target key start
LH: loop header
LB: loop body
LE: loop exit
PB: predicated region body
PF: predicated region fallthrough
CT: control target
= control target key end

     0   :  { %10 = vsyncpa [#allocation3], 0  ;;  %s638_s0 = inlined_call_operand.hbm [shape: f32[8,1024], index: 0, kind: input, shape index: {}]   ;;  %s639_s1 = inlined_call_operand.hbm [shape: f32[1024,128], index: 1, kind: input, shape index: {}]   ;;  %s640_s2 = inlined_call_operand.vmem [shape: f32[1,128], index: 2, kind: input, shape index: {}]   ;;  %s641_s3 = inlined_call_operand.hbm [shape: f32[128,128], index: 3, kind: input, shape index: {}]   ;;  %s642_s4 = inlined_call_operand.vmem [shape: f32[1,128], index: 4, kind: input, shape index: {}]   ;;  %s643_s5 = inlined_call_operand.hbm [shape: f32[8,128], index: 5, kind: output, shape index: {}]  }
   0x1   :  { %11 = vsyncpa [#allocation6], 0  ;;  %s28_s20 = sshll.u32 %s639_s1, 4  ;;  %s29_s20 = int_to_ptr.hbm [resolvable:$true] %s28_s20 }
   0x2   :  { %12 = vsyncpa [#allocation4], 0  ;;  %s584_s21 = smov [#allocation5]   ;;  %s18_s25 = sshll.u32 %s638_s0, 4  ;;  %s19_s25 = int_to_ptr.hbm [resolvable:$true] %s18_s25 }
   0x3   :  { %s30_s22 = sshll.u32 %s584_s21, 4  ;;  %s585_s26 = smov 128   ;;  %s31_s22 = int_to_ptr.vmem [resolvable:$true] %s30_s22 }
   0x4   :  { %s586_s27 = smov 8   ;;  %s587_s28 = smov [#allocation2]  }
   0x5   :  { %36 = dma.hbm_to_vmem [thread:$0]  %s29_s20, 16384, %s31_s22, [#allocation6], %s585_s26, %s585_s26, %s586_s27  }
   0x6   :  { %s20_s29 = sshll.u32 %s587_s28, 4  ;;  %s43_s7 = sshll.u32 %s641_s3, 4  ;;  %s21_s29 = int_to_ptr.vmem [resolvable:$true] %s20_s29  ;;  %s44_s7 = int_to_ptr.hbm [resolvable:$true] %s43_s7 }
   0x7   :  { %23 = dma.hbm_to_vmem [thread:$0]  %s19_s25, 1024, %s21_s29, [#allocation3]  }
   0x8   :  { %s588_s1 = smov [#allocation7]  }
   0x9   :  { %s45_s8 = sshll.u32 %s588_s1, 4  ;;  %s46_s8 = int_to_ptr.vmem [resolvable:$true] %s45_s8 }
   0xa   :  { %51 = dma.hbm_to_vmem [thread:$0]  %s44_s7, 2048, %s46_s8, [#allocation6], %s585_s26, %s585_s26, %s586_s27  }
   0xb   :  { %578 = dma.done.wait [#allocation3], 1024  }
   0xc   :  { %579 = vsyncadd [#allocation3], 4294966272 }
   0xd   :  { %580 = dma.done.wait [#allocation6], 18432  }
   0xe   :  { %581 = vsyncadd [#allocation6], 4294948864  ;;  %v121_v0 = vld [vmem:[#allocation5 + $0x178] sm:$0xff]  ;;  %v120_v2 = vld [vmem:[#allocation5 + $0x170] sm:$0xff]  ;;  %s455_s13 = sshll.u32 %s643_s5, 4  ;;  %s456_s13 = int_to_ptr.hbm [resolvable:$true] %s455_s13 }
   0xf   :  { %v89_v1 = vld [vmem:[#allocation5 + $0x78] sm:$0xff]  ;;  %246 = vmatpush.msra.mxu2 %v121_v0  ;;  %v88_v4 = vld [vmem:[#allocation5 + $0x70] sm:$0xff]  ;;  %v119_v6 = vld [vmem:[#allocation5 + $0x168] sm:$0xff] }
  0x10   :  { %206 = vmatpush.msra.mxu0 %v89_v1  ;;  %v137_v3 = vld [vmem:[#allocation5 + $0x1f8] sm:$0xff]  ;;  %v136_v7 = vld [vmem:[#allocation5 + $0x1f0] sm:$0xff]  ;;  %v87_v8 = vld [vmem:[#allocation5 + $0x68] sm:$0xff] }
  0x11   :  { %v105_v5 = vld [vmem:[#allocation5 + $0xf8] sm:$0xff]  ;;  %266 = vmatpush.msra.mxu3 %v137_v3  ;;  %247 = vmatpush.msra.mxu2 %v120_v2  ;;  %v104_v9 = vld [vmem:[#allocation5 + $0xf0] sm:$0xff]  ;;  %v135_v10 = vld [vmem:[#allocation5 + $0x1e8] sm:$0xff] }
  0x12   :  { %226 = vmatpush.msra.mxu1 %v105_v5  ;;  %207 = vmatpush.msra.mxu0 %v88_v4  ;;  %v118_v11 = vld [vmem:[#allocation5 + $0x160] sm:$0xff]  ;;  %v103_v13 = vld [vmem:[#allocation5 + $0xe8] sm:$0xff]  ;;  %v117_v16 = vld [vmem:[#allocation5 + $0x158] sm:$0xff] }
  0x13   :  { %267 = vmatpush.msra.mxu3 %v136_v7  ;;  %v86_v12 = vld [vmem:[#allocation5 + $0x60] sm:$0xff]  ;;  %248 = vmatpush.msra.mxu2 %v119_v6  ;;  %v85_v17 = vld [vmem:[#allocation5 + $0x58] sm:$0xff]  ;;  %v116_v20 = vld [vmem:[#allocation5 + $0x150] sm:$0xff] }
  0x14   :  { %227 = vmatpush.msra.mxu1 %v104_v9  ;;  %208 = vmatpush.msra.mxu0 %v87_v8  ;;  %v134_v14 = vld [vmem:[#allocation5 + $0x1e0] sm:$0xff]  ;;  %v133_v18 = vld [vmem:[#allocation5 + $0x1d8] sm:$0xff]  ;;  %v84_v21 = vld [vmem:[#allocation5 + $0x50] sm:$0xff] }
  0x15   :  { %v102_v15 = vld [vmem:[#allocation5 + $0xe0] sm:$0xff]  ;;  %268 = vmatpush.msra.mxu3 %v135_v10  ;;  %249 = vmatpush.msra.mxu2 %v118_v11  ;;  %v101_v19 = vld [vmem:[#allocation5 + $0xd8] sm:$0xff]  ;;  %v132_v22 = vld [vmem:[#allocation5 + $0x1d0] sm:$0xff] }
  0x16   :  { %228 = vmatpush.msra.mxu1 %v103_v13  ;;  %209 = vmatpush.msra.mxu0 %v86_v12  ;;  %v100_v23 = vld [vmem:[#allocation5 + $0xd0] sm:$0xff]  ;;  %v115_v24 = vld [vmem:[#allocation5 + $0x148] sm:$0xff]  ;;  %v114_v28 = vld [vmem:[#allocation5 + $0x140] sm:$0xff] }
  0x17   :  { %269 = vmatpush.msra.mxu3 %v134_v14  ;;  %250 = vmatpush.msra.mxu2 %v117_v16  ;;  %v83_v25 = vld [vmem:[#allocation5 + $0x48] sm:$0xff]  ;;  %v82_v29 = vld [vmem:[#allocation5 + $0x40] sm:$0xff]  ;;  %v113_v32 = vld [vmem:[#allocation5 + $0x138] sm:$0xff] }
  0x18   :  { %229 = vmatpush.msra.mxu1 %v102_v15  ;;  %210 = vmatpush.msra.mxu0 %v85_v17  ;;  %v131_v26 = vld [vmem:[#allocation5 + $0x1c8] sm:$0xff]  ;;  %v130_v30 = vld [vmem:[#allocation5 + $0x1c0] sm:$0xff]  ;;  %v81_v33 = vld [vmem:[#allocation5 + $0x38] sm:$0xff] }
  0x19   :  { %270 = vmatpush.msra.mxu3 %v133_v18  ;;  %251 = vmatpush.msra.mxu2 %v116_v20  ;;  %v99_v27 = vld [vmem:[#allocation5 + $0xc8] sm:$0xff]  ;;  %v98_v31 = vld [vmem:[#allocation5 + $0xc0] sm:$0xff]  ;;  %v129_v34 = vld [vmem:[#allocation5 + $0x1b8] sm:$0xff] }
  0x1a   :  { %230 = vmatpush.msra.mxu1 %v101_v19  ;;  %211 = vmatpush.msra.mxu0 %v84_v21  ;;  %v97_v35 = vld [vmem:[#allocation5 + $0xb8] sm:$0xff]  ;;  %v112_v36 = vld [vmem:[#allocation5 + $0x130] sm:$0xff]  ;;  %v111_v40 = vld [vmem:[#allocation5 + $0x128] sm:$0xff] }
  0x1b   :  { %271 = vmatpush.msra.mxu3 %v132_v22  ;;  %252 = vmatpush.msra.mxu2 %v115_v24  ;;  %v80_v37 = vld [vmem:[#allocation5 + $0x30] sm:$0xff]  ;;  %v79_v41 = vld [vmem:[#allocation5 + $0x28] sm:$0xff]  ;;  %v110_v44 = vld [vmem:[#allocation5 + $0x120] sm:$0xff] }
  0x1c   :  { %231 = vmatpush.msra.mxu1 %v100_v23  ;;  %212 = vmatpush.msra.mxu0 %v83_v25  ;;  %v128_v38 = vld [vmem:[#allocation5 + $0x1b0] sm:$0xff]  ;;  %v127_v42 = vld [vmem:[#allocation5 + $0x1a8] sm:$0xff]  ;;  %v78_v45 = vld [vmem:[#allocation5 + $0x20] sm:$0xff] }
  0x1d   :  { %272 = vmatpush.msra.mxu3 %v131_v26  ;;  %253 = vmatpush.msra.mxu2 %v114_v28  ;;  %v96_v39 = vld [vmem:[#allocation5 + $0xb0] sm:$0xff]  ;;  %v95_v43 = vld [vmem:[#allocation5 + $0xa8] sm:$0xff]  ;;  %v126_v46 = vld [vmem:[#allocation5 + $0x1a0] sm:$0xff] }
  0x1e   :  { %232 = vmatpush.msra.mxu1 %v99_v27  ;;  %213 = vmatpush.msra.mxu0 %v82_v29  ;;  %v94_v47 = vld [vmem:[#allocation5 + $0xa0] sm:$0xff]  ;;  %v109_v48 = vld [vmem:[#allocation5 + $0x118] sm:$0xff]  ;;  %v108_v52 = vld [vmem:[#allocation5 + $0x110] sm:$0xff] }
  0x1f   :  { %273 = vmatpush.msra.mxu3 %v130_v30  ;;  %254 = vmatpush.msra.mxu2 %v113_v32  ;;  %v77_v49 = vld [vmem:[#allocation5 + $0x18] sm:$0xff]  ;;  %v76_v53 = vld [vmem:[#allocation5 + $0x10] sm:$0xff]  ;;  %v107_v56 = vld [vmem:[#allocation5 + $0x108] sm:$0xff] }
  0x20   :  { %233 = vmatpush.msra.mxu1 %v98_v31  ;;  %214 = vmatpush.msra.mxu0 %v81_v33  ;;  %v125_v50 = vld [vmem:[#allocation5 + $0x198] sm:$0xff]  ;;  %v124_v54 = vld [vmem:[#allocation5 + $0x190] sm:$0xff]  ;;  %v75_v57 = vld [vmem:[#allocation5 + $0x8] sm:$0xff] }
  0x21   :  { %274 = vmatpush.msra.mxu3 %v129_v34  ;;  %255 = vmatpush.msra.mxu2 %v112_v36  ;;  %v93_v51 = vld [vmem:[#allocation5 + $0x98] sm:$0xff]  ;;  %v92_v55 = vld [vmem:[#allocation5 + $0x90] sm:$0xff]  ;;  %v123_v58 = vld [vmem:[#allocation5 + $0x188] sm:$0xff] }
  0x22   :  { %234 = vmatpush.msra.mxu1 %v97_v35  ;;  %215 = vmatpush.msra.mxu0 %v80_v37  ;;  %v91_v59 = vld [vmem:[#allocation5 + $0x88] sm:$0xff]  ;;  %v106_v60 = vld [vmem:[#allocation5 + $0x100] sm:$0xff]  ;;  %v185_v62 = vld [vmem:[#allocation5 + $0x378] sm:$0xff] }
  0x23   :  { %275 = vmatpush.msra.mxu3 %v128_v38  ;;  %256 = vmatpush.msra.mxu2 %v111_v40  ;;  %v74_v61 = vld [vmem:[#allocation5] sm:$0xff]  ;;  %v153_v0 = vld [vmem:[#allocation5 + $0x278] sm:$0xff]  ;;  %v184_v2 = vld [vmem:[#allocation5 + $0x370] sm:$0xff] }
  0x24   :  { %235 = vmatpush.msra.mxu1 %v96_v39  ;;  %216 = vmatpush.msra.mxu0 %v79_v41  ;;  %v122_v63 = vld [vmem:[#allocation5 + $0x180] sm:$0xff]  ;;  %v201_v1 = vld [vmem:[#allocation5 + $0x3f8] sm:$0xff]  ;;  %v152_v4 = vld [vmem:[#allocation5 + $0x270] sm:$0xff] }
  0x25   :  { %276 = vmatpush.msra.mxu3 %v127_v42  ;;  %257 = vmatpush.msra.mxu2 %v110_v44  ;;  %v90_v3 = vld [vmem:[#allocation5 + $0x80] sm:$0xff]  ;;  %v169_v5 = vld [vmem:[#allocation5 + $0x2f8] sm:$0xff]  ;;  %v183_v6 = vld [vmem:[#allocation5 + $0x368] sm:$0xff] }
  0x26   :  { %236 = vmatpush.msra.mxu1 %v95_v43  ;;  %217 = vmatpush.msra.mxu0 %v78_v45  ;;  %v200_v7 = vld [vmem:[#allocation5 + $0x3f0] sm:$0xff]  ;;  %v151_v8 = vld [vmem:[#allocation5 + $0x268] sm:$0xff]  ;;  %v182_v10 = vld [vmem:[#allocation5 + $0x360] sm:$0xff] }
  0x27   :  { %277 = vmatpush.msra.mxu3 %v126_v46  ;;  %258 = vmatpush.msra.mxu2 %v109_v48  ;;  %v168_v9 = vld [vmem:[#allocation5 + $0x2f0] sm:$0xff]  ;;  %v199_v11 = vld [vmem:[#allocation5 + $0x3e8] sm:$0xff]  ;;  %v150_v12 = vld [vmem:[#allocation5 + $0x260] sm:$0xff] }
  0x28   :  { %237 = vmatpush.msra.mxu1 %v94_v47  ;;  %218 = vmatpush.msra.mxu0 %v77_v49  ;;  %v167_v13 = vld [vmem:[#allocation5 + $0x2e8] sm:$0xff]  ;;  %v181_v14 = vld [vmem:[#allocation5 + $0x358] sm:$0xff]  ;;  %v198_v15 = vld [vmem:[#allocation5 + $0x3e0] sm:$0xff] }
  0x29   :  { %278 = vmatpush.msra.mxu3 %v125_v50  ;;  %259 = vmatpush.msra.mxu2 %v108_v52  ;;  %v149_v16 = vld [vmem:[#allocation5 + $0x258] sm:$0xff]  ;;  %v166_v17 = vld [vmem:[#allocation5 + $0x2e0] sm:$0xff]  ;;  %v180_v18 = vld [vmem:[#allocation5 + $0x350] sm:$0xff] }
  0x2a   :  { %238 = vmatpush.msra.mxu1 %v93_v51  ;;  %219 = vmatpush.msra.mxu0 %v76_v53  ;;  %v197_v19 = vld [vmem:[#allocation5 + $0x3d8] sm:$0xff]  ;;  %v148_v20 = vld [vmem:[#allocation5 + $0x250] sm:$0xff]  ;;  %v179_v22 = vld [vmem:[#allocation5 + $0x348] sm:$0xff] }
  0x2b   :  { %279 = vmatpush.msra.mxu3 %v124_v54  ;;  %260 = vmatpush.msra.mxu2 %v107_v56  ;;  %v165_v21 = vld [vmem:[#allocation5 + $0x2d8] sm:$0xff]  ;;  %v196_v23 = vld [vmem:[#allocation5 + $0x3d0] sm:$0xff]  ;;  %v147_v24 = vld [vmem:[#allocation5 + $0x248] sm:$0xff] }
  0x2c   :  { %239 = vmatpush.msra.mxu1 %v92_v55  ;;  %220 = vmatpush.msra.mxu0 %v75_v57  ;;  %v164_v25 = vld [vmem:[#allocation5 + $0x2d0] sm:$0xff]  ;;  %v178_v26 = vld [vmem:[#allocation5 + $0x340] sm:$0xff]  ;;  %v195_v27 = vld [vmem:[#allocation5 + $0x3c8] sm:$0xff] }
  0x2d   :  { %280 = vmatpush.msra.mxu3 %v123_v58  ;;  %261 = vmatpush.msra.mxu2 %v106_v60  ;;  %v146_v28 = vld [vmem:[#allocation5 + $0x240] sm:$0xff]  ;;  %v163_v29 = vld [vmem:[#allocation5 + $0x2c8] sm:$0xff]  ;;  %v177_v30 = vld [vmem:[#allocation5 + $0x338] sm:$0xff] }
  0x2e   :  { %240 = vmatpush.msra.mxu1 %v91_v59  ;;  %221 = vmatpush.msra.mxu0 %v74_v61  ;;  %v194_v31 = vld [vmem:[#allocation5 + $0x3c0] sm:$0xff]  ;;  %v145_v32 = vld [vmem:[#allocation5 + $0x238] sm:$0xff]  ;;  %v176_v34 = vld [vmem:[#allocation5 + $0x330] sm:$0xff] }
  0x2f   :  { %326 = vmatpush.msrb.mxu2 %v185_v62  ;;  %281 = vmatpush.msra.mxu3 %v122_v63  ;;  %v162_v33 = vld [vmem:[#allocation5 + $0x2c0] sm:$0xff]  ;;  %v193_v35 = vld [vmem:[#allocation5 + $0x3b8] sm:$0xff]  ;;  %v144_v36 = vld [vmem:[#allocation5 + $0x230] sm:$0xff] }
  0x30   :  { %286 = vmatpush.msrb.mxu0 %v153_v0  ;;  %241 = vmatpush.msra.mxu1 %v90_v3  ;;  %v161_v37 = vld [vmem:[#allocation5 + $0x2b8] sm:$0xff]  ;;  %v175_v38 = vld [vmem:[#allocation5 + $0x328] sm:$0xff]  ;;  %v192_v39 = vld [vmem:[#allocation5 + $0x3b0] sm:$0xff] }
  0x31   :  { %346 = vmatpush.msrb.mxu3 %v201_v1  ;;  %327 = vmatpush.msrb.mxu2 %v184_v2  ;;  %v143_v40 = vld [vmem:[#allocation5 + $0x228] sm:$0xff]  ;;  %v160_v41 = vld [vmem:[#allocation5 + $0x2b0] sm:$0xff]  ;;  %v174_v42 = vld [vmem:[#allocation5 + $0x320] sm:$0xff] }
  0x32   :  { %287 = vmatpush.msrb.mxu0 %v152_v4  ;;  %306 = vmatpush.msrb.mxu1 %v169_v5  ;;  %v191_v43 = vld [vmem:[#allocation5 + $0x3a8] sm:$0xff]  ;;  %v68_v44 = vld [vmem:[#allocation2 + $0x10] sm:$0xff]  ;;  %v142_v45 = vld [vmem:[#allocation5 + $0x220] sm:$0xff] }
  0x33   :  { %328 = vmatpush.msrb.mxu2 %v183_v6  ;;  %347 = vmatpush.msrb.mxu3 %v200_v7  ;;  %v159_v46 = vld [vmem:[#allocation5 + $0x2a8] sm:$0xff]  ;;  %v173_v47 = vld [vmem:[#allocation5 + $0x318] sm:$0xff]  ;;  %v190_v48 = vld [vmem:[#allocation5 + $0x3a0] sm:$0xff] }
  0x34   :  { %288 = vmatpush.msrb.mxu0 %v151_v8  ;;  %307 = vmatpush.msrb.mxu1 %v168_v9  ;;  %v66_v49 = vld [vmem:[#allocation2] sm:$0xff]  ;;  %v69_v50 = vld [vmem:[#allocation2 + $0x18] sm:$0xff]  ;;  %v172_v53 = vld [vmem:[#allocation5 + $0x310] sm:$0xff] }
  0x35   :  { %329 = vmatpush.msrb.mxu2 %v182_v10  ;;  %348 = vmatpush.msrb.mxu3 %v199_v11  ;;  %v141_v51 = vld [vmem:[#allocation5 + $0x218] sm:$0xff]  ;;  %v158_v52 = vld [vmem:[#allocation5 + $0x2a0] sm:$0xff]  ;;  %v67_v55 = vld [vmem:[#allocation2 + $0x8] sm:$0xff] }
  0x36   :  { %289 = vmatpush.msrb.mxu0 %v150_v12  ;;  %308 = vmatpush.msrb.mxu1 %v167_v13  ;;  %v189_v54 = vld [vmem:[#allocation5 + $0x398] sm:$0xff]  ;;  %v140_v56 = vld [vmem:[#allocation5 + $0x210] sm:$0xff]  ;;  %v171_v58 = vld [vmem:[#allocation5 + $0x308] sm:$0xff] }
  0x37   :  { %330 = vmatpush.msrb.mxu2 %v181_v14  ;;  %349 = vmatpush.msrb.mxu3 %v198_v15  ;;  %v157_v57 = vld [vmem:[#allocation5 + $0x298] sm:$0xff]  ;;  %v188_v59 = vld [vmem:[#allocation5 + $0x390] sm:$0xff]  ;;  %v139_v60 = vld [vmem:[#allocation5 + $0x208] sm:$0xff] }
  0x38   :  { %290 = vmatpush.msrb.mxu0 %v149_v16  ;;  %309 = vmatpush.msrb.mxu1 %v166_v17  ;;  %v156_v61 = vld [vmem:[#allocation5 + $0x290] sm:$0xff]  ;;  %v170_v62 = vld [vmem:[#allocation5 + $0x300] sm:$0xff]  ;;  %v187_v63 = vld [vmem:[#allocation5 + $0x388] sm:$0xff] }
  0x39   :  { %331 = vmatpush.msrb.mxu2 %v180_v18  ;;  %350 = vmatpush.msrb.mxu3 %v197_v19  ;;  %v72_v0 = vld [vmem:[#allocation2 + $0x30] sm:$0xff]  ;;  %v138_v1 = vld [vmem:[#allocation5 + $0x200] sm:$0xff]  ;;  %v155_v2 = vld [vmem:[#allocation5 + $0x288] sm:$0xff] }
  0x3a   :  { %291 = vmatpush.msrb.mxu0 %v148_v20  ;;  %310 = vmatpush.msrb.mxu1 %v165_v21  ;;  %v186_v3 = vld [vmem:[#allocation5 + $0x380] sm:$0xff]  ;;  %v73_v5 = vld [vmem:[#allocation2 + $0x38] sm:$0xff]  ;;  %v71_v7 = vld [vmem:[#allocation2 + $0x28] sm:$0xff] }
  0x3b   :  { %332 = vmatpush.msrb.mxu2 %v179_v22  ;;  %351 = vmatpush.msrb.mxu3 %v196_v23  ;;  %v70_v4 = vld [vmem:[#allocation2 + $0x20] sm:$0xff]  ;;  %v400_v8 = vld [vmem:[#allocation7 + $0x78] sm:$0xff]  ;;  %v399_v9 = vld [vmem:[#allocation7 + $0x70] sm:$0xff] }
  0x3c   :  { %292 = vmatpush.msrb.mxu0 %v147_v24  ;;  %311 = vmatpush.msrb.mxu1 %v164_v25  ;;  %v154_v6 = vld [vmem:[#allocation5 + $0x280] sm:$0xff]  ;;  %v398_v10 = vld [vmem:[#allocation7 + $0x68] sm:$0xff]  ;;  %v396_v12 = vld [vmem:[#allocation7 + $0x58] sm:$0xff] }
  0x3d   :  { %333 = vmatpush.msrb.mxu2 %v178_v26  ;;  %352 = vmatpush.msrb.mxu3 %v195_v27  ;;  %v397_v11 = vld [vmem:[#allocation7 + $0x60] sm:$0xff]  ;;  %v395_v13 = vld [vmem:[#allocation7 + $0x50] sm:$0xff]  ;;  %v394_v15 = vld [vmem:[#allocation7 + $0x48] sm:$0xff] }
  0x3e   :  { %293 = vmatpush.msrb.mxu0 %v146_v28  ;;  %312 = vmatpush.msrb.mxu1 %v163_v29  ;;  %v472_v14 = vld [vmem:[%s640_s2] ss:$0 sm:$0xff]  ;;  %v392_v18 = vld [vmem:[#allocation7 + $0x38] sm:$0xff]  ;;  %v391_v20 = vld [vmem:[#allocation7 + $0x30] sm:$0xff] }
  0x3f   :  { %334 = vmatpush.msrb.mxu2 %v177_v30  ;;  %353 = vmatpush.msrb.mxu3 %v194_v31  ;;  %v393_v16 = vld [vmem:[#allocation7 + $0x40] sm:$0xff]  ;;  %v390_v22 = vld [vmem:[#allocation7 + $0x28] sm:$0xff]  ;;  %v388_v28 = vld [vmem:[#allocation7 + $0x18] sm:$0xff] }
  0x40   :  { %294 = vmatpush.msrb.mxu0 %v145_v32  ;;  %313 = vmatpush.msrb.mxu1 %v162_v33  ;;  %v389_v25 = vld [vmem:[#allocation7 + $0x20] sm:$0xff]  ;;  %v387_v30 = vld [vmem:[#allocation7 + $0x10] sm:$0xff]  ;;  %v386_v33 = vld [vmem:[#allocation7 + $0x8] sm:$0xff] }
  0x41   :  { %335 = vmatpush.msrb.mxu2 %v176_v34  ;;  %354 = vmatpush.msrb.mxu3 %v193_v35 }
  0x42   :  { %295 = vmatpush.msrb.mxu0 %v144_v36  ;;  %314 = vmatpush.msrb.mxu1 %v161_v37  ;;  %v385_v36 = vld [vmem:[#allocation7] sm:$0xff] }
  0x43   :  { %336 = vmatpush.msrb.mxu2 %v175_v38  ;;  %355 = vmatpush.msrb.mxu3 %v192_v39 }
  0x44   :  { %296 = vmatpush.msrb.mxu0 %v143_v40  ;;  %315 = vmatpush.msrb.mxu1 %v160_v41 }
  0x45   :  { %337 = vmatpush.msrb.mxu2 %v174_v42  ;;  %356 = vmatpush.msrb.mxu3 %v191_v43 }
  0x46   :  { %262 = vmatmul.f32.vlgmr.msra.gmra.mxu2 %v68_v44  ;;  %297 = vmatpush.msrb.mxu0 %v142_v45 }
  0x47   :  { %316 = vmatpush.msrb.mxu1 %v159_v46  ;;  %338 = vmatpush.msrb.mxu2 %v173_v47 }
  0x48   :  { %357 = vmatpush.msrb.mxu3 %v190_v48  ;;  %222 = vmatmul.f32.vlgmr.msra.gmra.mxu0 %v66_v49 }
  0x49   :  { %282 = vmatmul.f32.vlgmr.msra.gmra.mxu3 %v69_v50  ;;  %298 = vmatpush.msrb.mxu0 %v141_v51 }
  0x4a   :  { %317 = vmatpush.msrb.mxu1 %v158_v52  ;;  %339 = vmatpush.msrb.mxu2 %v172_v53 }
  0x4b   :  { %358 = vmatpush.msrb.mxu3 %v189_v54  ;;  %242 = vmatmul.f32.vlgmr.msra.gmra.mxu1 %v67_v55  ;;  %v473_v55 = vld [vmem:[%s642_s4] ss:$0 sm:$0xff]  ;;  %s589_s4 = smov [#allocation8]  }
  0x4c   :  { %299 = vmatpush.msrb.mxu0 %v140_v56  ;;  %318 = vmatpush.msrb.mxu1 %v157_v57  ;;  %s453_s10 = sshll.u32 %s589_s4, 4  ;;  %s454_s10 = int_to_ptr.vmem [resolvable:$true] %s453_s10 }
  0x4d   :  { %340 = vmatpush.msrb.mxu2 %v171_v58  ;;  %359 = vmatpush.msrb.mxu3 %v188_v59 }
  0x4e   :  { %300 = vmatpush.msrb.mxu0 %v139_v60  ;;  %319 = vmatpush.msrb.mxu1 %v156_v61 }
  0x4f   :  { %341 = vmatpush.msrb.mxu2 %v170_v62  ;;  %360 = vmatpush.msrb.mxu3 %v187_v63 }
  0x50   :  { %342 = vmatmul.f32.vlgmr.msrb.gmra.mxu2 %v72_v0  ;;  %301 = vmatpush.msrb.mxu0 %v138_v1 }
  0x51   :  { %320 = vmatpush.msrb.mxu1 %v155_v2  ;;  %361 = vmatpush.msrb.mxu3 %v186_v3 }
  0x52   :  { %302 = vmatmul.f32.vlgmr.msrb.gmra.mxu0 %v70_v4  ;;  %362 = vmatmul.f32.vlgmr.msrb.gmra.mxu3 %v73_v5 }
  0x53   :  { %321 = vmatpush.msrb.mxu1 %v154_v6  ;;  %405 = vmatpush.msra.mxu0 %v400_v8 }
  0x54   :  { %322 = vmatmul.f32.vlgmr.msrb.gmra.mxu1 %v71_v7 }
  0x55   :  { %406 = vmatpush.msra.mxu0 %v399_v9 }
  0x57   :  { %407 = vmatpush.msra.mxu0 %v398_v10 }
  0x59   :  { %408 = vmatpush.msra.mxu0 %v397_v11 }
  0x5b   :  { %409 = vmatpush.msra.mxu0 %v396_v12 }
  0x5d   :  { %410 = vmatpush.msra.mxu0 %v395_v13 }
  0x5f   :  { %411 = vmatpush.msra.mxu0 %v394_v15 }
  0x61   :  { %412 = vmatpush.msra.mxu0 %v393_v16 }
  0x63   :  { %413 = vmatpush.msra.mxu0 %v392_v18 }
  0x65   :  { %414 = vmatpush.msra.mxu0 %v391_v20 }
  0x67   :  { %415 = vmatpush.msra.mxu0 %v390_v22 }
  0x69   :  { %416 = vmatpush.msra.mxu0 %v389_v25 }
  0x6b   :  { %417 = vmatpush.msra.mxu0 %v388_v28 }
  0x6d   :  { %418 = vmatpush.msra.mxu0 %v387_v30 }
  0x6f   :  { %419 = vmatpush.msra.mxu0 %v386_v33 }
  0x71   :  { %420 = vmatpush.msra.mxu0 %v385_v36 }
  0xc5   :  { %v223_v17 = vpop.f32.mrf.mxu0 }
  0xc6   :  { %v224_v19 = vadd.f32 %v472_v14, %v223_v17 }
  0xc8   :  { %v243_v21 = vpop.f32.mrf.mxu1 }
  0xc9   :  { %v244_v23 = vadd.f32 %v243_v21, %v224_v19  ;;  %v263_v24 = vpop.f32.mrf.mxu2 }
  0xcb   :  { %v264_v26 = vadd.f32 %v263_v24, %v244_v23 }
  0xcc   :  { %v283_v27 = vpop.f32.mrf.mxu3 }
  0xcd   :  { %v284_v29 = vadd.f32 %v283_v27, %v264_v26 }
  0xcf   :  { %v303_v31 = vpop.f32.mrf.mxu0 }
  0xd0   :  { %v304_v32 = vadd.f32 %v303_v31, %v284_v29 }
  0xd1   :  { %v323_v34 = vpop.f32.mrf.mxu1 }
  0xd2   :  { %v324_v35 = vadd.f32 %v323_v34, %v304_v32 }
  0xd3   :  { %v343_v37 = vpop.f32.mrf.mxu2 }
  0xd4   :  { %v344_v38 = vadd.f32 %v343_v37, %v324_v35 }
  0xd5   :  { %v363_v39 = vpop.f32.mrf.mxu3 }
  0xd6   :  { %v364_v40 = vadd.f32 %v363_v39, %v344_v38 }
  0xd8   :  { %v366_v41 = vsub.f32 0.0, %v364_v40 }
  0xda   :  { %v367_v42 = vmul.f32 1.442695, %v366_v41 }
  0xdc   :  { %474 = vpow2.f32 %v367_v42 }
  0xe2   :  { %v475_v43 = vpop.eup %474 }
  0xe3   :  { %v369_v44 = vadd.f32 1.0, %v475_v43 }
  0xe5   :  { %476 = vrcp.f32 %v369_v44  ;;  %v381_v48 = vand.u32 2147483648, %v369_v44  ;;  %v379_v50 = vand.u32 2147483647, %v369_v44  ;;  %vm375_vm1 = vweird.f32 %v369_v44 }
  0xe7   :  { %v382_v52 = vor.u32 1.1754944e-38, %v381_v48  ;;  %vm380_vm3 = vcmp.eq.f32.partialorder %v379_v50, 8.507059e+37 }
  0xeb   :  { %v477_v45 = vpop.eup %476 }
  0xec   :  { %v371_v46 = vmul.f32 %v477_v45, %v369_v44  ;;  %vm376_vm0 = vweird.f32 %v477_v45 }
  0xed   :  { %vm377_vm2 = vmor %vm375_vm1, %vm376_vm0 }
  0xee   :  { %v372_v47 = vsub.f32 1.0, %v371_v46 }
  0xf0   :  { %v373_v49 = vmul.f32 %v477_v45, %v372_v47 }
  0xf2   :  { %v374_v51 = vadd.f32 %v477_v45, %v373_v49 }
  0xf4   :  { %v378_v53 = vsel %vm377_vm2, %v477_v45, %v374_v51 }
  0xf5   :  { %v383_v54 = vsel %vm380_vm3, %v382_v52, %v378_v53 }
  0xf6   :  { %421 = vmatmul.f32.vlgmr.msra.gmra.mxu0 %v383_v54 }
 0x173   :  { %v422_v56 = vpop.f32.mrf.mxu0 }
 0x174   :  { %v423_v57 = vadd.f32 %v473_v55, %v422_v56 }
 0x176   :  { %425 = vmax.xlane.f32.xlu0 %v423_v57 }
 0x1e9   :  { %v426_v58 = vpop.xlane.xlu0 %425 }
 0x1ea   :  { %v427_v59 = vsub.f32 %v423_v57, %v426_v58 }
 0x1ec   :  { %v428_v60 = vmul.f32 1.442695, %v427_v59 }
 0x1ee   :  { %478 = vpow2.f32 %v428_v60 }
 0x1f4   :  { %v479_v61 = vpop.eup %478 }
 0x1f5   :  { %430 = vadd.xlane.f32.xlu0 %v479_v61 }
 0x268   :  { %v431_v62 = vpop.xlane.xlu0 %430 }
 0x269   :  { %480 = vrcp.f32 %v431_v62  ;;  %v443_v2 = vand.u32 2147483648, %v431_v62  ;;  %v441_v4 = vand.u32 2147483647, %v431_v62  ;;  %vm437_vm5 = vweird.f32 %v431_v62 }
 0x26b   :  { %v444_v6 = vor.u32 1.1754944e-38, %v443_v2  ;;  %vm442_vm7 = vcmp.eq.f32.partialorder %v441_v4, 8.507059e+37 }
 0x26f   :  { %v481_v63 = vpop.eup %480 }
 0x270   :  { %v433_v0 = vmul.f32 %v481_v63, %v431_v62  ;;  %vm438_vm4 = vweird.f32 %v481_v63 }
 0x271   :  { %vm439_vm6 = vmor %vm437_vm5, %vm438_vm4 }
 0x272   :  { %v434_v1 = vsub.f32 1.0, %v433_v0 }
 0x274   :  { %v435_v3 = vmul.f32 %v481_v63, %v434_v1 }
 0x276   :  { %v436_v5 = vadd.f32 %v481_v63, %v435_v3 }
 0x278   :  { %v440_v7 = vsel %vm439_vm6, %v481_v63, %v436_v5 }
 0x279   :  { %v445_v8 = vsel %vm442_vm7, %v444_v6, %v440_v7 }
 0x27a   :  { %v446_v9 = vmul.f32 %v479_v61, %v445_v8 }
 0x27c   :  { %447 = vst [vmem:[#allocation8] sm:$0xff] %v446_v9 }
 0x27d   :  { %458 = dma.vmem_to_hbm [thread:$0]  %s454_s10, 128, %s456_s13, [#allocation4]  }
 0x27e   :  { %582 = dma.done.wait [#allocation4], 128  }
 0x27f   :  { %583 = vsyncadd [#allocation4], 4294967168 }
 0x280   :  { %463 = vsyncpa [#allocation3], 1 }
 0x281   :  { %464 = vsyncpa [#allocation6], 1 }
 0x282   :  { %465 = vsyncpa [#allocation4], 1 }

</bundles_post_ra>
